<compile_context>
chip_gen: v7x
topology: tpu7x:2x2x1
jax: 0.10.0
libtpu: 0.0.40
codegen_flags: <defaults>
</compile_context>

<pallas_src>
import functools

import jax
import jax.numpy as jnp
from jax.experimental import pallas as pl
from jax.experimental.pallas import tpu as pltpu


def _round_up(a: int, m: int) -> int:
    return ((a + m - 1) // m) * m


def _cdiv(a: int, b: int) -> int:
    return (a + b - 1) // b


def global_model_kernel(node_nf, u_ref, xt_ref, batch_ref, w1u_ref, w1x_ref,
                        b1_ref, w2_ref, b2_ref, o_ref, sum_ref, hu_ref):
    n = pl.program_id(1)

    @pl.when(n == 0)
    def _init():
        sum_ref[...] = jnp.zeros_like(sum_ref)
        # Hoist the u-path of the MLP off the final-chunk critical path; it is
        # identical for every node chunk of this graph tile.
        hu_ref[...] = (jnp.dot(u_ref[...], w1u_ref[...],
                               preferred_element_type=jnp.float32)
                       + b1_ref[...])

    tb = sum_ref.shape[0]
    gids = jax.lax.broadcasted_iota(jnp.int32, (tb, 1), 0) + pl.program_id(0) * tb
    seg = batch_ref[...]                               # [1, TN] int32 (-1 = padding)
    onehot = (seg == gids).astype(jnp.bfloat16)        # [TB, TN]; 0/1 exact in bf16

    # One MXU pass yields per-graph feature sums AND node counts (the ones-row
    # of xt).  Contract the node axis of both operands (flash-attn QK^T style);
    # bf16 x bf16 -> f32 accumulation.
    sum_ref[...] += jax.lax.dot_general(
        onehot, xt_ref[...],
        dimension_numbers=(((1,), (1,)), ((), ())),
        preferred_element_type=jnp.float32)

    @pl.when(n == pl.num_programs(1) - 1)
    def _finish():
        sums = sum_ref[...]                            # [TB, NFP] f32
        cnt = sums[:, node_nf:node_nf + 1]             # counts live in column node_nf
        mean = jnp.where(cnt > 0.0, sums / jnp.maximum(cnt, 1.0), 0.0)
        # Fused concat: cat([u, mean_x]) @ w1 == u @ w1[:g] + mean_x @ w1[g:].
        # Extra mean columns (ones column / row padding) hit zero rows of the
        # padded w1_x, so no lane slicing is needed.
        h = jnp.maximum(
            hu_ref[...] + jnp.dot(mean, w1x_ref[...],
                                  preferred_element_type=jnp.float32),
            0.0)
        o = jnp.dot(h, w2_ref[...], preferred_element_type=jnp.float32) + b2_ref[...]
        o_ref[...] = o.astype(o_ref.dtype)
        # TODO(synk): output last dim (global_nf) is lane-sparse; fuse the
        # downstream consumer or pack outputs if this write ever dominates.


def global_model_forward(x, edge_index, edge_attr, u, batch, params):
    """JAX/Pallas equivalent of GlobalModel.forward.

    x: [N, node_nf] node features; u: [B, global_nf] globals;
    batch: [N] int32 node->graph map.  edge_index/edge_attr are unused by the
    reference forward (kept for API parity).
    """
    del edge_index, edge_attr
    w1, b1, w2, b2 = params

    N, node_nf = x.shape
    B, global_nf = u.shape
    hidden_nf = w1.shape[1]

    NFP = _round_up(node_nf + 1, 8)     # features + ones column, sublane-padded

    # Graph row tile: >= 2 blocks whenever B allows so the "parallel" axis has
    # work for both v7x TensorCores; node chunk large enough to amortize the
    # ~0.35 us per-grid-step overhead.  VMEM use at (TB=512, TN=2048, bf16
    # onehot) is ~3 MiB -> safe under the scoped default on every generation.
    TB = min(512, max(8, _round_up(_cdiv(_round_up(B, 8), 2), 8)))
    TN = min(2048, _round_up(N, 128))
    Bp = _round_up(B, TB)
    Np = _round_up(N, TN)

    # Lane-dense bf16 feature slab: [NFP, Np] with nodes on lanes.  Row node_nf
    # is all-ones for valid nodes (counts), padded columns are all-zero so they
    # never contribute to sums or counts.
    xt = jnp.zeros((NFP, Np), jnp.bfloat16)
    xt = xt.at[:node_nf, :N].set(x.astype(jnp.bfloat16).T)
    xt = xt.at[node_nf, :N].set(jnp.ones((N,), jnp.bfloat16))

    u_p = jnp.zeros((Bp, global_nf), jnp.float32).at[:B].set(u.astype(jnp.float32))
    batch_p = jnp.full((1, Np), -1, jnp.int32).at[0, :N].set(batch.astype(jnp.int32))

    # Split w1 so the concat is fused inside the kernel; pad the mean_x part to
    # NFP rows (zeros for the ones-column / padding rows).
    w1 = w1.astype(jnp.float32)
    w1_u = w1[:global_nf]
    w1_x = jnp.zeros((NFP, hidden_nf), jnp.float32).at[:node_nf].set(w1[global_nf:])

    grid = (Bp // TB, Np // TN)
    const = lambda b, n: (0, 0)

    flops = (2 * Bp * Np * NFP
             + 2 * Bp * (global_nf * hidden_nf + NFP * hidden_nf
                         + hidden_nf * global_nf))
    bytes_accessed = (2 * NFP * Np + 4 * Np + 2 * 4 * Bp * global_nf
                      + 4 * ((global_nf + NFP) * hidden_nf
                             + hidden_nf * global_nf + hidden_nf + global_nf))

    out_p = pl.pallas_call(
        functools.partial(global_model_kernel, node_nf),
        out_shape=jax.ShapeDtypeStruct((Bp, global_nf), jnp.float32),
        grid=grid,
        in_specs=[
            pl.BlockSpec((TB, global_nf), lambda b, n: (b, 0)),     # u
            pl.BlockSpec((NFP, TN), lambda b, n: (0, n)),           # x^T (+ones row)
            pl.BlockSpec((1, TN), lambda b, n: (0, n)),             # batch ids
            pl.BlockSpec((global_nf, hidden_nf), const),            # w1_u (resident)
            pl.BlockSpec((NFP, hidden_nf), const),                  # w1_x (resident)
            pl.BlockSpec((1, hidden_nf), const),                    # b1
            pl.BlockSpec((hidden_nf, global_nf), const),            # w2
            pl.BlockSpec((1, global_nf), const),                    # b2
        ],
        out_specs=pl.BlockSpec((TB, global_nf), lambda b, n: (b, 0)),
        scratch_shapes=[
            pltpu.VMEM((TB, NFP), jnp.float32),        # per-graph sums + counts
            pltpu.VMEM((TB, hidden_nf), jnp.float32),  # hoisted u-path of the MLP
        ],
        compiler_params=pltpu.CompilerParams(
            dimension_semantics=("parallel", "arbitrary")),
        cost_estimate=pl.CostEstimate(flops=int(flops), transcendentals=0,
                                      bytes_accessed=int(bytes_accessed)),
    )(u_p, xt, batch_p, w1_u, w1_x, b1.reshape(1, -1).astype(jnp.float32),
      w2.astype(jnp.float32), b2.reshape(1, -1).astype(jnp.float32))

    # TODO(synk): for very large graph counts (TB >~ 1-2K) switch the scatter to
    # scalar-prefetched segment sums (batch is sorted) to avoid O(N*TB) work.
    return out_p[:B]


def init_params(key, node_nf, edge_nf, global_nf, hidden_nf):
    """Deterministic init mimicking nn.Linear default (uniform +-1/sqrt(fan_in))."""
    del edge_nf  # unused by GlobalModel's MLP
    in_dim = global_nf + node_nf
    k1, k2, k3, k4 = jax.random.split(key, 4)
    lim1 = 1.0 / jnp.sqrt(in_dim)
    lim2 = 1.0 / jnp.sqrt(hidden_nf)
    w1 = jax.random.uniform(k1, (in_dim, hidden_nf), jnp.float32, -lim1, lim1)
    b1 = jax.random.uniform(k2, (hidden_nf,), jnp.float32, -lim1, lim1)
    w2 = jax.random.uniform(k3, (hidden_nf, global_nf), jnp.float32, -lim2, lim2)
    b2 = jax.random.uniform(k4, (global_nf,), jnp.float32, -lim2, lim2)
    return (w1, b1, w2, b2)


if __name__ == "__main__":
    node_nf, edge_nf, global_nf, hidden_nf = 4, 4, 4, 32
    num_nodes, num_edges, num_graphs = 8, 8, 2

    key = jax.random.PRNGKey(0)
    kp, kx, ke, ku, kb = jax.random.split(key, 5)

    params = init_params(kp, node_nf, edge_nf, global_nf, hidden_nf)

    x = jax.random.normal(kx, (num_nodes, node_nf), jnp.float32)
    edge_index = jnp.stack([jnp.arange(num_edges, dtype=jnp.int32) % num_nodes,
                            (jnp.arange(num_edges, dtype=jnp.int32) + 1) % num_nodes])
    edge_attr = jax.random.normal(ke, (num_edges, edge_nf), jnp.float32)
    u = jax.random.normal(ku, (num_graphs, global_nf), jnp.float32)
    batch = jnp.sort(jax.random.randint(kb, (num_nodes,), 0, num_graphs, jnp.int32))

    out = global_model_forward(x, edge_index, edge_attr, u, batch, params)
    jax.block_until_ready(out)

    # Pure-JAX reference: scatter-mean + concat + 2-layer MLP.  The kernel's
    # scatter uses a bf16 MXU pass (exact one-hot, bf16-truncated x), so the
    # reference scatter uses the same truncation of x.
    w1, b1, w2, b2 = params
    x_bf = x.astype(jnp.bfloat16).astype(jnp.float32)
    sums = jnp.zeros((num_graphs, node_nf), jnp.float32).at[batch].add(x_bf)
    cnts = jnp.zeros((num_graphs,), jnp.float32).at[batch].add(1.0)
    mean_x = jnp.where(cnts[:, None] > 0,
                       sums / jnp.maximum(cnts[:, None], 1.0), 0.0)
    ref_in = jnp.concatenate([u, mean_x], axis=1)
    ref = jnp.maximum(ref_in @ w1 + b1, 0.0) @ w2 + b2

    assert out.shape == (num_graphs, global_nf)
    assert jnp.allclose(out, ref, atol=5e-3, rtol=5e-3), float(jnp.abs(out - ref).max())

    print("KERNEL_OK")
</pallas_src>

<mosaic_0001>
module attributes {stable_mosaic.version = 11 : i64} {
  func.func @global_model_kernel(%arg0: i32, %arg1: i32, %arg2: memref<8x4xf32, #tpu.memory_space<vmem>>, %arg3: memref<8x128xbf16, #tpu.memory_space<vmem>>, %arg4: memref<1x128xi32, #tpu.memory_space<vmem>>, %arg5: memref<4x32xf32, #tpu.memory_space<vmem>>, %arg6: memref<8x32xf32, #tpu.memory_space<vmem>>, %arg7: memref<1x32xf32, #tpu.memory_space<vmem>>, %arg8: memref<32x4xf32, #tpu.memory_space<vmem>>, %arg9: memref<1x4xf32, #tpu.memory_space<vmem>>, %arg10: memref<8x4xf32, #tpu.memory_space<vmem>>, %arg11: memref<8x8xf32, #tpu.memory_space<vmem>>, %arg12: memref<8x32xf32, #tpu.memory_space<vmem>>) attributes {dimension_semantics = [#tpu.dimension_semantics<parallel>, #tpu.dimension_semantics<arbitrary>], iteration_bounds = array<i64: 1, 1>, scalar_prefetch = 0 : i64, scratch_operands = 2 : i64, tpu.core_type = #tpu.core_type<tc>, window_params = [{transform_indices = @transform_0, window_bounds = array<i64: 8, 4>}, {transform_indices = @transform_1, window_bounds = array<i64: 8, 128>}, {transform_indices = @transform_2, window_bounds = array<i64: 1, 128>}, {pipeline_mode = #tpu.pipeline_mode<synchronous>, transform_indices = @transform_3, window_bounds = array<i64: 4, 32>}, {pipeline_mode = #tpu.pipeline_mode<synchronous>, transform_indices = @transform_4, window_bounds = array<i64: 8, 32>}, {pipeline_mode = #tpu.pipeline_mode<synchronous>, transform_indices = @transform_5, window_bounds = array<i64: 1, 32>}, {pipeline_mode = #tpu.pipeline_mode<synchronous>, transform_indices = @transform_6, window_bounds = array<i64: 32, 4>}, {pipeline_mode = #tpu.pipeline_mode<synchronous>, transform_indices = @transform_7, window_bounds = array<i64: 1, 4>}, {transform_indices = @transform_8, window_bounds = array<i64: 8, 4>}]} {
    %c0_i32 = arith.constant 0 : i32
    %0 = arith.cmpi eq, %arg1, %c0_i32 : i32
    %1 = arith.extui %0 : i1 to i32
    %c0_i32_0 = arith.constant 0 : i32
    %2 = arith.cmpi ne, %1, %c0_i32_0 : i32
    scf.if %2 {
      %cst_10 = arith.constant 0.000000e+00 : f32
      %22 = vector.broadcast %cst_10 : f32 to vector<8x8xf32>
      %c0_11 = arith.constant 0 : index
      %c0_12 = arith.constant 0 : index
      %23 = vector.load %arg11[%c0_11, %c0_12] : memref<8x8xf32, #tpu.memory_space<vmem>>, vector<8x8xf32>
      tpu.vector_store %arg11[%c0_11, %c0_12], %22 {strides = array<i32>} : memref<8x8xf32, #tpu.memory_space<vmem>>, vector<8x8xf32>,
      %c0_13 = arith.constant 0 : index
      %c0_14 = arith.constant 0 : index
      %24 = vector.load %arg2[%c0_13, %c0_14] : memref<8x4xf32, #tpu.memory_space<vmem>>, vector<8x4xf32>
      %c0_15 = arith.constant 0 : index
      %c0_16 = arith.constant 0 : index
      %25 = vector.load %arg5[%c0_15, %c0_16] : memref<4x32xf32, #tpu.memory_space<vmem>>, vector<4x32xf32>
      %cst_17 = arith.constant dense<0.000000e+00> : vector<8x32xf32>
      %26 = tpu.matmul %24, %25, %cst_17 {dimension_numbers = #tpu.dot_dimension_numbers<[1], [0], [0], [1], [0, 0, 1, 1], [], []>} : vector<8x4xf32>, vector<4x32xf32>, vector<8x32xf32> -> vector<8x32xf32>
      %c0_18 = arith.constant 0 : index
      %c0_19 = arith.constant 0 : index
      %27 = vector.load %arg7[%c0_18, %c0_19] : memref<1x32xf32, #tpu.memory_space<vmem>>, vector<1x32xf32>
      %28 = vector.broadcast %27 : vector<1x32xf32> to vector<8x32xf32>
      %29 = arith.addf %26, %28 : vector<8x32xf32>
      %c0_20 = arith.constant 0 : index
      %c0_21 = arith.constant 0 : index
      %30 = vector.load %arg12[%c0_20, %c0_21] : memref<8x32xf32, #tpu.memory_space<vmem>>, vector<8x32xf32>
      tpu.vector_store %arg12[%c0_20, %c0_21], %29 {strides = array<i32>} : memref<8x32xf32, #tpu.memory_space<vmem>>, vector<8x32xf32>,
    } else {
    }
    %3 = tpu.iota {dimensions = array<i32: 0>} : vector<8x1xi32>
    %c8_i32 = arith.constant 8 : i32
    %4 = arith.muli %arg0, %c8_i32 : i32
    %5 = vector.broadcast %4 : i32 to vector<8x1xi32>
    %6 = arith.addi %3, %5 : vector<8x1xi32>
    %c0 = arith.constant 0 : index
    %c0_1 = arith.constant 0 : index
    %7 = vector.load %arg4[%c0, %c0_1] : memref<1x128xi32, #tpu.memory_space<vmem>>, vector<1x128xi32>
    %8 = vector.broadcast %7 : vector<1x128xi32> to vector<8x128xi32>
    %9 = vector.broadcast %6 : vector<8x1xi32> to vector<8x128xi32>
    %10 = arith.cmpi eq, %8, %9 : vector<8x128xi32>
    %11 = arith.extui %10 : vector<8x128xi1> to vector<8x128xi32>
    %12 = arith.sitofp %11 : vector<8x128xi32> to vector<8x128xf32>
    %13 = arith.truncf %12 : vector<8x128xf32> to vector<8x128xbf16>
    %c0_2 = arith.constant 0 : index
    %c0_3 = arith.constant 0 : index
    %14 = vector.load %arg11[%c0_2, %c0_3] : memref<8x8xf32, #tpu.memory_space<vmem>>, vector<8x8xf32>
    %c0_4 = arith.constant 0 : index
    %c0_5 = arith.constant 0 : index
    %15 = vector.load %arg3[%c0_4, %c0_5] : memref<8x128xbf16, #tpu.memory_space<vmem>>, vector<8x128xbf16>
    %cst = arith.constant dense<0.000000e+00> : vector<8x8xf32>
    %16 = tpu.matmul %13, %15, %cst {dimension_numbers = #tpu.dot_dimension_numbers<[1], [1], [0], [0], [0, 0, 1, 0], [], []>} : vector<8x128xbf16>, vector<8x128xbf16>, vector<8x8xf32> -> vector<8x8xf32>
    %17 = arith.addf %14, %16 : vector<8x8xf32>
    %c0_6 = arith.constant 0 : index
    %c0_7 = arith.constant 0 : index
    %18 = vector.load %arg11[%c0_6, %c0_7] : memref<8x8xf32, #tpu.memory_space<vmem>>, vector<8x8xf32>
    tpu.vector_store %arg11[%c0_6, %c0_7], %17 {strides = array<i32>} : memref<8x8xf32, #tpu.memory_space<vmem>>, vector<8x8xf32>,
    %c0_i32_8 = arith.constant 0 : i32
    %19 = arith.cmpi eq, %arg1, %c0_i32_8 : i32
    %20 = arith.extui %19 : i1 to i32
    %c0_i32_9 = arith.constant 0 : i32
    %21 = arith.cmpi ne, %20, %c0_i32_9 : i32
    scf.if %21 {
      %c0_10 = arith.constant 0 : index
      %c0_11 = arith.constant 0 : index
      %22 = vector.load %arg11[%c0_10, %c0_11] : memref<8x8xf32, #tpu.memory_space<vmem>>, vector<8x8xf32>
      %23 = vector.extract_strided_slice %22 {offsets = [0, 4], sizes = [8, 1], strides = [1, 1]} : vector<8x8xf32> to vector<8x1xf32>
      %cst_12 = arith.constant 0.000000e+00 : f32
      %24 = vector.broadcast %cst_12 : f32 to vector<8x1xf32>
      %25 = arith.cmpf ogt, %23, %24 : vector<8x1xf32>
      %cst_13 = arith.constant 1.000000e+00 : f32
      %26 = vector.broadcast %cst_13 : f32 to vector<8x1xf32>
      %27 = arith.maximumf %23, %26 : vector<8x1xf32>
      %28 = vector.broadcast %27 : vector<8x1xf32> to vector<8x8xf32>
      %29 = arith.divf %22, %28 : vector<8x8xf32>
      %cst_14 = arith.constant 0.000000e+00 : f32
      %30 = vector.shape_cast %25 : vector<8x1xi1> to vector<8x1xi1>
      %31 = vector.broadcast %30 : vector<8x1xi1> to vector<8x8xi1>
      %32 = vector.broadcast %cst_14 : f32 to vector<8x8xf32>
      %33 = arith.select %31, %29, %32 : vector<8x8xi1>, vector<8x8xf32>
      %c0_15 = arith.constant 0 : index
      %c0_16 = arith.constant 0 : index
      %34 = vector.load %arg12[%c0_15, %c0_16] : memref<8x32xf32, #tpu.memory_space<vmem>>, vector<8x32xf32>
      %c0_17 = arith.constant 0 : index
      %c0_18 = arith.constant 0 : index
      %35 = vector.load %arg6[%c0_17, %c0_18] : memref<8x32xf32, #tpu.memory_space<vmem>>, vector<8x32xf32>
      %cst_19 = arith.constant dense<0.000000e+00> : vector<8x32xf32>
      %36 = tpu.matmul %33, %35, %cst_19 {dimension_numbers = #tpu.dot_dimension_numbers<[1], [0], [0], [1], [0, 0, 1, 1], [], []>} : vector<8x8xf32>, vector<8x32xf32>, vector<8x32xf32> -> vector<8x32xf32>
      %37 = arith.addf %34, %36 : vector<8x32xf32>
      %cst_20 = arith.constant 0.000000e+00 : f32
      %38 = vector.broadcast %cst_20 : f32 to vector<8x32xf32>
      %39 = arith.maximumf %37, %38 : vector<8x32xf32>
      %c0_21 = arith.constant 0 : index
      %c0_22 = arith.constant 0 : index
      %40 = vector.load %arg8[%c0_21, %c0_22] : memref<32x4xf32, #tpu.memory_space<vmem>>, vector<32x4xf32>
      %cst_23 = arith.constant dense<0.000000e+00> : vector<8x4xf32>
      %41 = tpu.matmul %39, %40, %cst_23 {dimension_numbers = #tpu.dot_dimension_numbers<[1], [0], [0], [1], [0, 0, 1, 1], [], []>} : vector<8x32xf32>, vector<32x4xf32>, vector<8x4xf32> -> vector<8x4xf32>
      %c0_24 = arith.constant 0 : index
      %c0_25 = arith.constant 0 : index
      %42 = vector.load %arg9[%c0_24, %c0_25] : memref<1x4xf32, #tpu.memory_space<vmem>>, vector<1x4xf32>
      %43 = vector.broadcast %42 : vector<1x4xf32> to vector<8x4xf32>
      %44 = arith.addf %41, %43 : vector<8x4xf32>
      %c0_26 = arith.constant 0 : index
      %c0_27 = arith.constant 0 : index
      %45 = vector.load %arg10[%c0_26, %c0_27] : memref<8x4xf32, #tpu.memory_space<vmem>>, vector<8x4xf32>
      tpu.vector_store %arg10[%c0_26, %c0_27], %44 {strides = array<i32>} : memref<8x4xf32, #tpu.memory_space<vmem>>, vector<8x4xf32>,
    } else {
    }
    return
  }
  func.func @transform_0(%arg0: i32, %arg1: i32) -> (i32, i32) {
    %c0_i32 = arith.constant 0 : i32
    %c0_i32_0 = arith.constant 0 : i32
    return %arg0, %c0_i32 : i32, i32
  }
  func.func @transform_1(%arg0: i32, %arg1: i32) -> (i32, i32) {
    %c0_i32 = arith.constant 0 : i32
    %c0_i32_0 = arith.constant 0 : i32
    return %c0_i32, %arg1 : i32, i32
  }
  func.func @transform_2(%arg0: i32, %arg1: i32) -> (i32, i32) {
    %c0_i32 = arith.constant 0 : i32
    %c0_i32_0 = arith.constant 0 : i32
    return %c0_i32, %arg1 : i32, i32
  }
  func.func @transform_3(%arg0: i32, %arg1: i32) -> (i32, i32) {
    %c0_i32 = arith.constant 0 : i32
    %c0_i32_0 = arith.constant 0 : i32
    %c0_i32_1 = arith.constant 0 : i32
    return %c0_i32, %c0_i32_0 : i32, i32
  }
  func.func @transform_4(%arg0: i32, %arg1: i32) -> (i32, i32) {
    %c0_i32 = arith.constant 0 : i32
    %c0_i32_0 = arith.constant 0 : i32
    %c0_i32_1 = arith.constant 0 : i32
    return %c0_i32, %c0_i32_0 : i32, i32
  }
  func.func @transform_5(%arg0: i32, %arg1: i32) -> (i32, i32) {
    %c0_i32 = arith.constant 0 : i32
    %c0_i32_0 = arith.constant 0 : i32
    %c0_i32_1 = arith.constant 0 : i32
    return %c0_i32, %c0_i32_0 : i32, i32
  }
  func.func @transform_6(%arg0: i32, %arg1: i32) -> (i32, i32) {
    %c0_i32 = arith.constant 0 : i32
    %c0_i32_0 = arith.constant 0 : i32
    %c0_i32_1 = arith.constant 0 : i32
    return %c0_i32, %c0_i32_0 : i32, i32
  }
  func.func @transform_7(%arg0: i32, %arg1: i32) -> (i32, i32) {
    %c0_i32 = arith.constant 0 : i32
    %c0_i32_0 = arith.constant 0 : i32
    %c0_i32_1 = arith.constant 0 : i32
    return %c0_i32, %c0_i32_0 : i32, i32
  }
  func.func @transform_8(%arg0: i32, %arg1: i32) -> (i32, i32) {
    %c0_i32 = arith.constant 0 : i32
    %c0_i32_0 = arith.constant 0 : i32
    return %arg0, %c0_i32 : i32, i32
  }
}

</mosaic_0001>

<bundles_post_ra>
// kernel: tpu_custom_call.1
= control target key start
LH: loop header
LB: loop body
LE: loop exit
PB: predicated region body
PF: predicated region fallthrough
CT: control target
= control target key end

     0   :  { %v125_v0 = vlaneseq  ;;  %v434_v1 = vmov 0.0   ;;  %vm435_vm0 = vmmov 0   ;;  %vm34_vm1 = vcmask 64512   ;;  %s530_s1 = inlined_call_operand.vmem [shape: bf16[8,128], index: 1, kind: input, shape index: {}]   ;;  %s531_s2 = inlined_call_operand.vmem [shape: s32[1,128], index: 2, kind: input, shape index: {}]   ;;  %s532_s3 = inlined_call_operand.vmem [shape: f32[4,32], index: 3, kind: input, shape index: {}]   ;;  %s533_s0 = inlined_call_operand.vmem [shape: f32[8,4], index: 0, kind: input, shape index: {}]   ;;  %s534_s4 = inlined_call_operand.vmem [shape: f32[8,32], index: 4, kind: input, shape index: {}]   ;;  %s535_s6 = inlined_call_operand.vmem [shape: f32[32,4], index: 6, kind: input, shape index: {}]   ;;  %s536_s5 = inlined_call_operand.vmem [shape: f32[1,32], index: 5, kind: input, shape index: {}]   ;;  %s537_s7 = inlined_call_operand.vmem [shape: f32[1,4], index: 7, kind: input, shape index: {}]   ;;  %s538_s8 = inlined_call_operand.vmem [shape: f32[8,4], index: 8, kind: output, shape index: {}]  }
   0x1   :  { %397 = vmatprep.subr.bf16.mxu1 %v434_v1  ;;  %v140_v2 = vld [vmem:[%s530_s1] sm:$0xf]  ;;  %399 = vmatprep.mubr.msk.bf16.mxu1 %vm435_vm0, %v434_v1  ;;  %35 = vst.msk [vmem:[#allocation2] sm:$0xff] %vm34_vm1, %v434_v1  ;;  %v436_v5 = vmov 1.0|1.0   ;;  %v437_v6 = vmov 4  }
   0x2   :  { %v374_v3 = vld [vmem:[%s531_s2] ss:$0 sm:$0xff]  ;;  %398 = vmatpush3.bf16.xpose.msra.mxu1 %v140_v2  ;;  %v126_v4 = vshrl.u32 %v125_v0, 7  ;;  %392 = vmatprep.subr.mxu0 %v434_v1  ;;  %vm49_vm5 = vcmask 1043456   ;;  %vm45_vm6 = vcmask 31744   ;;  %v438_v17 = vmov 0  }
   0x3   :  { %394 = vmatprep.mubr.msk.f32.mxu0 %vm435_vm0, %v434_v1  ;;  %431 = vset.pattern.permute.xlu0 %v437_v6  ;;  %v37_v15 = vld [vmem:[%s532_s3] sm:$0xf]  ;;  %v439_v20 = vmov 0.0|0.0   ;;  %v281_v23 = vld [vmem:[%s535_s6 + $0x8] sm:$0xff]  ;;  %vm123_vm8 = vcmask 261120   ;;  %v282_v33 = vld [vmem:[%s535_s6 + $0x10] sm:$0xff] }
   0x4   :  { %vm135_vm2 = vcmp.eq.s32.totalorder %v374_v3, %v126_v4  ;;  %393 = vmatpush3.msk.msra.mxu0 %vm49_vm5, %v37_v15  ;;  %v36_v16 = vld [vmem:[%s533_s0] sm:$0xff]  ;;  %v283_v34 = vld [vmem:[%s535_s6 + $0x18] sm:$0xff] }
   0x5   :  { %vm376_vm3 = vmpackc.low %vm135_vm2, %vm135_vm2  ;;  %395 = vmatmul.mubr.msk.f32.vlgmr.msra.gmra.mrb[0].mxu0 %vm45_vm6, %v36_v16  ;;  %403 = vmatprep.subr.mxu0 %v434_v1  ;;  %v204_v19 = vld [vmem:[%s534_s4] sm:$0xff]  ;;  %v423_v35 = vpack.c.bf16 %v283_v34, %v282_v33 }
   0x6   :  { %405 = vmatprep.mubr.msk.f32.mxu0 %vm435_vm0, %v434_v1  ;;  %404 = vmatpush3.msra.mxu0 %v204_v19  ;;  %v280_v22 = vld [vmem:[%s535_s6] sm:$0xff] }
   0x7   :  { %419 = vmatprep.subr.bf16.mxu0 %v439_v20  ;;  %v420_v27 = vpack.c.bf16 %v281_v23, %v280_v22  ;;  %v371_v29 = vld [vmem:[%s536_s5] ss:$0 sm:$0xff] }
   0x8   :  { %v139_v7 = vld [vmem:[#allocation2] sm:$0xff] }
   0x9   :  { %400 = vmatmul.mubr.msk.bf16.vlgmr.msra.gmra.mrb[0].mxu1 %vm376_vm3, %v436_v5  ;;  %v379_v41 = vld [vmem:[%s537_s7] ss:$0 sm:$0xff] }
  0xd8   :  { %v119_v30 = vpop.f32.mrb[0].mxu0 }
  0xd9   :  { %v120_v31 = vadd.f32 %v371_v29, %v119_v30  ;;  %v396_v32 = vpop.f32.mrb[1].mxu0 }
  0xdb   :  { %124 = vst.msk [vmem:[#allocation3] sm:$0xff] %vm123_vm8, %v120_v31 }
  0xdc   :  { %v175_v8 = vpop.f32.mrb[0].mxu1 }
  0xdd   :  { %v181_v9 = vadd.f32 %v175_v8, %v139_v7  ;;  %v401_v10 = vpop.f32.mrb[1].mxu1 }
  0xde   :  { %v178_v11 = vpop.f32.mrb[2].mxu1 }
  0xdf   :  { %183 = vst.msk [vmem:[#allocation2] sm:$0xff] %vm34_vm1, %v181_v9  ;;  %v402_v12 = vpop.f32.mrb[3].mxu1 }
  0xe2   :  { %v203_v36 = vld [vmem:[#allocation3] sm:$0xff] }
  0xe6   :  { %v187_v13 = vld [vmem:[#allocation2] sm:$0xff] }
  0xe7   :  { %v189_v14 = vmax.f32 %v187_v13, 1.0  ;;  %vm188_vm4 = vcmp.gt.f32.partialorder %v187_v13, 0.0 }
  0xe8   :  { %v197_v18 = vsel %vm188_vm4, 1, %v438_v17 }
  0xe9   :  { %192 = vperm.xlu0 %431, %v189_v14  }
  0xed   :  { %199 = vperm.xlu0 %431, %v197_v18  }
 0x168   :  { %v193_v21 = vpop.permute.xlu0 %192 }
 0x169   :  { %432 = vrcp.f32 %v193_v21 }
 0x16c   :  { %v200_v24 = vpop.permute.xlu0 %199 }
 0x16d   :  { %vm201_vm7 = vcmp.eq.s32.totalorder %v200_v24, 1 }
 0x173   :  { %v433_v25 = vpop.eup %432 }
 0x174   :  { %v196_v26 = vmul.f32 %v433_v25, %v187_v13 }
 0x176   :  { %v202_v28 = vsel %vm201_vm7, %v196_v26, 0.0 }
 0x177   :  { %406 = vmatmul.mubr.msk.f32.vlgmr.msra.gmra.mrb[2].mxu0 %vm34_vm1, %v202_v28 }
 0x178   :  { %421 = vmatpush3.bf16.msra.mxu0 %v420_v27  ;;  %416 = vmatprep.mubr.msk.f32.mxu0 %vm435_vm0, %v434_v1 }
 0x179   :  { %422 = vmatprep.subr.bf16.mxu0 %v439_v20 }
 0x17c   :  { %424 = vmatpush3.bf16.msra.mxu0 %v423_v35 }
 0x24a   :  { %v274_v37 = vpop.f32.mrb[2].mxu0 }
 0x24b   :  { %v278_v38 = vadd.f32 %v274_v37, %v203_v36  ;;  %v407_v39 = vpop.f32.mrb[3].mxu0 }
 0x24d   :  { %v279_v40 = vmax.f32 %v278_v38, 0.0 }
 0x24f   :  { %417 = vmatmul.mubr.msk.f32.vlgmr.msra.gmra.mrb[4].mxu0 %vm123_vm8, %v279_v40 }
 0x322   :  { %v361_v42 = vpop.f32.mrb[4].mxu0 }
 0x323   :  { %v362_v43 = vadd.f32 %v379_v41, %v361_v42  ;;  %v418_v44 = vpop.f32.mrb[5].mxu0 }
 0x325   :  { %366 = vst.msk [vmem:[%s538_s8] sm:$0xff] %vm45_vm6, %v362_v43 }

</bundles_post_ra>
